<compile_context>
chip_gen: v7x
topology: tpu7x:2x2x1
jax: 0.10.0
libtpu: 0.0.40
codegen_flags: <defaults>
</compile_context>

<pallas_src>
import functools
import math

import jax
import jax.numpy as jnp
from jax.experimental import pallas as pl
from jax.experimental.pallas import tpu as pltpu

_LANE = 128
_SUBLANE = 8


def _vmem_caps():
    """(per-input-buffer byte cap, explicit vmem_limit_bytes), generation-aware."""
    try:
        phys = getattr(pltpu.get_tpu_info(), "vmem_capacity_bytes", 64 << 20)
    except Exception:
        phys = 64 << 20
    if phys >= (96 << 20):          # v5e / v6e: 128 MiB physical VMEM per core
        return 8 << 20, 64 << 20
    return 4 << 20, 28 << 20        # v7x-class: 64 MiB physical, 32 MiB scoped


def _pick_tile(total, cap, gran):
    """Tile for one axis:
      - full extent if it fits the cap (a full-extent block dim is always legal);
      - else the largest multiple-of-`gran` divisor <= cap (no padding);
      - else cap rounded down to `gran` (cdiv grid; Pallas pads the last block,
        callers mask garbage or rely on dropped out-of-range writes).
    Never raises (works for e.g. 250x250 spatial inputs)."""
    if total <= cap:
        return int(total)
    cap_g = max(gran, (cap // gran) * gran)
    t = cap_g
    while t >= gran:
        if total % t == 0:
            return int(t)
        t -= gran
    return int(cap_g)


# ---------- stage 1a: fused variance + weights-mean (whole (N, D) in one block) ----------
def _var_wmean_fused_kernel(f_ref, out_ref, *, alpha, beta):
    x = f_ref[...].astype(jnp.float32)                          # (N, D)
    n = x.shape[0]
    mean = jnp.mean(x, axis=0, keepdims=True)
    # torch.var default: unbiased (N-1 denominator); n==1 -> NaN, same as torch.
    var = jnp.sum((x - mean) ** 2, axis=0, keepdims=True) / (n - 1)   # (1, D)
    vmin = jnp.min(var, axis=1, keepdims=True)
    vmax = jnp.max(var, axis=1, keepdims=True)
    norm = (var - vmin) / (vmax - vmin)                          # first-call norm_global
    w = jnp.exp(norm * beta) - 1.0 + alpha
    out_ref[...] = jnp.sum(w, axis=1, keepdims=True) / var.shape[1]


# ---------- stage 1b: per-feature variance, full batch per block, D tiled ----------
def _var_kernel(f_ref, var_ref):
    x = f_ref[...].astype(jnp.float32)                          # (N, TD)
    n = x.shape[0]
    mean = jnp.mean(x, axis=0, keepdims=True)
    var_ref[...] = jnp.sum((x - mean) ** 2, axis=0, keepdims=True) / (n - 1)


# ---------- stage 1c: per-feature variance, batch tiled (two-moment accumulation) ----------
def _var2m_kernel(f_ref, var_ref, s_ref, ss_ref, *, n_total, tn, mask_rows):
    k = pl.program_id(1)

    @pl.when(k == 0)
    def _():
        s_ref[...] = jnp.zeros_like(s_ref)
        ss_ref[...] = jnp.zeros_like(ss_ref)

    x = f_ref[...].astype(jnp.float32)                          # (TN, TD)
    if mask_rows:
        row = jax.lax.broadcasted_iota(jnp.int32, x.shape, 0) + k * tn
        x = jnp.where(row < n_total, x, 0.0)
    s_ref[...] += jnp.sum(x, axis=0, keepdims=True)
    ss_ref[...] += jnp.sum(x * x, axis=0, keepdims=True)

    @pl.when(k == pl.num_programs(1) - 1)
    def _():
        s = s_ref[...]
        var_ref[...] = (ss_ref[...] - s * s / n_total) / (n_total - 1)


# ---------- stage 2: per-(batch,class) row-sums of BCEWithLogits ----------
def _bce_rowsum_kernel(x_ref, t_ref, out_ref, acc_ref, *, hw_total, tm, mask_lanes):
    j = pl.program_id(1)

    @pl.when(j == 0)
    def _():
        acc_ref[...] = jnp.zeros_like(acc_ref)

    x = x_ref[...].astype(jnp.float32)                          # (TR, TM)
    t = t_ref[...].astype(jnp.float32)
    # numerically-stable BCEWithLogits: max(x,0) - x*t + log1p(exp(-|x|))
    bce = jnp.maximum(x, 0.0) - x * t + jnp.log1p(jnp.exp(-jnp.abs(x)))
    if mask_lanes:
        lane = jax.lax.broadcasted_iota(jnp.int32, bce.shape, 1) + j * tm
        bce = jnp.where(lane < hw_total, bce, 0.0)
    acc_ref[...] += bce                                          # lane-wide accumulator

    @pl.when(j == pl.num_programs(1) - 1)
    def _():
        out_ref[...] = jnp.sum(acc_ref[...], axis=1, keepdims=True)   # (TR, 1)


# ---------- wrapper ----------
def bias_loss(features, output, target, weight, *,
              alpha=0.3, beta=0.3, num_classes=11):
    per_buf_cap, vmem_limit = _vmem_caps()

    # ===== stage 1: weights mean from per-feature unbiased variance =====
    n = features.shape[0]
    d = int(math.prod(features.shape[1:]))
    f2 = features.reshape(n, d)          # free contiguous reshape, cast happens in-kernel
    f_isz = jnp.dtype(features.dtype).itemsize

    if n * d * f_isz <= per_buf_cap:
        # Common case: whole (N, D) in one block -> single fused kernel
        # (no separate stage-2 launch, no variance HBM round-trip).
        wmean = pl.pallas_call(
            functools.partial(_var_wmean_fused_kernel, alpha=alpha, beta=beta),
            out_shape=jax.ShapeDtypeStruct((1, 1), jnp.float32),
            grid_spec=pltpu.PrefetchScalarGridSpec(
                num_scalar_prefetch=0, grid=(1,),
                in_specs=[pl.BlockSpec((n, d), lambda i: (0, 0))],
                out_specs=pl.BlockSpec((1, 1), lambda i: (0, 0)),
                scratch_shapes=[]),
            compiler_params=pltpu.CompilerParams(
                dimension_semantics=("arbitrary",), vmem_limit_bytes=vmem_limit),
        )(f2)[0, 0]
    else:
        if n * _LANE * f_isz <= per_buf_cap:
            # Full batch per block, tile the feature axis.
            cap_td = max(_LANE, (per_buf_cap // (n * f_isz)) // _LANE * _LANE)
            td = _pick_tile(d, cap_td, _LANE)
            var = pl.pallas_call(
                _var_kernel,
                out_shape=jax.ShapeDtypeStruct((1, d), jnp.float32),
                grid_spec=pltpu.PrefetchScalarGridSpec(
                    num_scalar_prefetch=0, grid=(pl.cdiv(d, td),),
                    in_specs=[pl.BlockSpec((n, td), lambda i: (0, i))],
                    out_specs=pl.BlockSpec((1, td), lambda i: (0, i)),
                    scratch_shapes=[]),
                compiler_params=pltpu.CompilerParams(
                    dimension_semantics=("parallel",), vmem_limit_bytes=vmem_limit),
            )(f2)
        else:
            # Very large batch: tile N as well; two-moment accumulation + epilogue.
            cap_td = max(_LANE, (per_buf_cap // (1024 * f_isz)) // _LANE * _LANE)
            td = _pick_tile(d, cap_td, _LANE)
            cap_tn = max(_SUBLANE,
                         (per_buf_cap // (td * f_isz)) // _SUBLANE * _SUBLANE)
            tn = _pick_tile(n, cap_tn, _SUBLANE)
            var = pl.pallas_call(
                functools.partial(_var2m_kernel, n_total=n, tn=tn,
                                  mask_rows=(n % tn != 0)),
                out_shape=jax.ShapeDtypeStruct((1, d), jnp.float32),
                grid_spec=pltpu.PrefetchScalarGridSpec(
                    num_scalar_prefetch=0, grid=(pl.cdiv(d, td), pl.cdiv(n, tn)),
                    in_specs=[pl.BlockSpec((tn, td), lambda i, k: (k, i))],
                    out_specs=pl.BlockSpec((1, td), lambda i, k: (0, i)),
                    scratch_shapes=[pltpu.VMEM((1, td), jnp.float32),
                                    pltpu.VMEM((1, td), jnp.float32)]),
                compiler_params=pltpu.CompilerParams(
                    dimension_semantics=("parallel", "arbitrary"),
                    vmem_limit_bytes=vmem_limit),
            )(f2)
        # Tiny (D,) row: min/max/exp/mean in plain JAX (XLA fuses it into one
        # pass; avoids a dedicated kernel launch -- per review feedback).
        v = var[0]
        vmin, vmax = jnp.min(v), jnp.max(v)
        wmean = jnp.mean(jnp.exp((v - vmin) / (vmax - vmin) * beta) - 1.0 + alpha)

    # ===== stage 2: class-weighted BCEWithLogits =====
    nb, c, h, w = output.shape
    assert c == num_classes
    hw = h * w
    nc = nb * c
    # (N*C, H*W) is a free contiguous reshape; the class axis stays out of the
    # sublane dim (no 11->16 padding waste).  Caller may pass bf16 here.
    x2 = output.reshape(nc, hw)
    t2 = target.reshape(nc, hw)
    o_isz = jnp.dtype(output.dtype).itemsize

    tr = _pick_tile(nc, 512, _SUBLANE)
    cap_tm = max(_LANE, (per_buf_cap // max(1, tr * o_isz)) // _LANE * _LANE)
    tm = _pick_tile(hw, cap_tm, _LANE)

    row_sums = pl.pallas_call(
        functools.partial(_bce_rowsum_kernel, hw_total=hw, tm=tm,
                          mask_lanes=(hw % tm != 0)),
        out_shape=jax.ShapeDtypeStruct((nc, 1), jnp.float32),
        grid_spec=pltpu.PrefetchScalarGridSpec(
            num_scalar_prefetch=0, grid=(pl.cdiv(nc, tr), pl.cdiv(hw, tm)),
            in_specs=[pl.BlockSpec((tr, tm), lambda i, j: (i, j)),
                      pl.BlockSpec((tr, tm), lambda i, j: (i, j))],
            out_specs=pl.BlockSpec((tr, 1), lambda i, j: (i, 0)),
            scratch_shapes=[pltpu.VMEM((tr, tm), jnp.float32)]),
        compiler_params=pltpu.CompilerParams(
            # row axis is decoupled from the accumulator -> shard across v7x cores
            dimension_semantics=("parallel", "arbitrary"),
            vmem_limit_bytes=vmem_limit),
    )(x2, t2)

    # Tiny epilogue over N*C numbers: per-class mean, class weighting, class mean.
    per_class = jnp.sum(row_sums.reshape(nb, c), axis=0) / (nb * hw)
    bce_val = jnp.mean(per_class * jnp.asarray(weight, jnp.float32).reshape(c))

    # loss = weights.mean() * BCEWeighted(output, target)
    return wmean * bce_val


if __name__ == "__main__":
    key = jax.random.PRNGKey(0)
    k1, k2, k3 = jax.random.split(key, 3)

    # features: (N=2, Cf=8, H=16, W=16)  -> D = 2048
    features = jax.random.normal(k1, (2, 8, 16, 16), dtype=jnp.float32)
    # logits / targets: (N=2, num_classes=11, H=16, W=16) -> H*W = 256, N*C = 22
    logits = jax.random.normal(k2, (2, 11, 16, 16), dtype=jnp.float32)
    targets = (jax.random.uniform(k3, (2, 11, 16, 16)) > 0.5).astype(jnp.float32)
    # deterministic parameter init: default class weights = ones(11)
    weight = jnp.ones((11,), dtype=jnp.float32)

    loss = bias_loss(features, logits, targets, weight,
                     alpha=0.3, beta=0.3, num_classes=11)
    jax.block_until_ready(loss)
    print("KERNEL_OK")
</pallas_src>

<mosaic_0001>
module attributes {stable_mosaic.version = 11 : i64} {
  func.func @_var_wmean_fused_kernel(%arg0: i32, %arg1: memref<2x2048xf32, #tpu.memory_space<vmem>>, %arg2: memref<1x1xf32, #tpu.memory_space<vmem>>) attributes {dimension_semantics = [#tpu.dimension_semantics<arbitrary>], iteration_bounds = array<i64: 1>, scalar_prefetch = 0 : i64, scratch_operands = 0 : i64, tpu.core_type = #tpu.core_type<tc>, window_params = [{pipeline_mode = #tpu.pipeline_mode<synchronous>, transform_indices = @transform_0, window_bounds = array<i64: 2, 2048>}, {pipeline_mode = #tpu.pipeline_mode<synchronous>, transform_indices = @transform_1, window_bounds = array<i64: 1, 1>}]} {
    %c0 = arith.constant 0 : index
    %c0_0 = arith.constant 0 : index
    %0 = vector.load %arg1[%c0, %c0_0] : memref<2x2048xf32, #tpu.memory_space<vmem>>, vector<2x2048xf32>
    %cst = arith.constant dense<0.000000e+00> : vector<2048xf32>
    %1 = vector.multi_reduction <add>, %0, %cst [0] : vector<2x2048xf32> to vector<2048xf32>
    %2 = vector.shape_cast %1 : vector<2048xf32> to vector<1x2048xf32>
    %cst_1 = arith.constant 2.000000e+00 : f32
    %3 = vector.broadcast %cst_1 : f32 to vector<1x2048xf32>
    %4 = arith.divf %2, %3 : vector<1x2048xf32>
    %5 = vector.broadcast %4 : vector<1x2048xf32> to vector<2x2048xf32>
    %6 = arith.subf %0, %5 : vector<2x2048xf32>
    %7 = arith.mulf %6, %6 : vector<2x2048xf32>
    %cst_2 = arith.constant dense<0.000000e+00> : vector<2048xf32>
    %8 = vector.multi_reduction <add>, %7, %cst_2 [0] : vector<2x2048xf32> to vector<2048xf32>
    %9 = vector.shape_cast %8 : vector<2048xf32> to vector<1x2048xf32>
    %cst_3 = arith.constant 1.000000e+00 : f32
    %10 = vector.broadcast %cst_3 : f32 to vector<1x2048xf32>
    %11 = arith.divf %9, %10 : vector<1x2048xf32>
    %cst_4 = arith.constant dense<0x7F800000> : vector<1xf32>
    %12 = vector.multi_reduction <minimumf>, %11, %cst_4 [1] : vector<1x2048xf32> to vector<1xf32>
    %13 = vector.shape_cast %12 : vector<1xf32> to vector<1x1xf32>
    %cst_5 = arith.constant dense<0xFF800000> : vector<1xf32>
    %14 = vector.multi_reduction <maximumf>, %11, %cst_5 [1] : vector<1x2048xf32> to vector<1xf32>
    %15 = vector.shape_cast %14 : vector<1xf32> to vector<1x1xf32>
    %16 = vector.broadcast %13 : vector<1x1xf32> to vector<1x2048xf32>
    %17 = arith.subf %11, %16 : vector<1x2048xf32>
    %18 = arith.subf %15, %13 : vector<1x1xf32>
    %19 = vector.broadcast %18 : vector<1x1xf32> to vector<1x2048xf32>
    %20 = arith.divf %17, %19 : vector<1x2048xf32>
    %cst_6 = arith.constant 3.000000e-01 : f32
    %21 = vector.broadcast %cst_6 : f32 to vector<1x2048xf32>
    %22 = arith.mulf %20, %21 : vector<1x2048xf32>
    %23 = math.exp %22 : vector<1x2048xf32>
    %cst_7 = arith.constant 1.000000e+00 : f32
    %24 = vector.broadcast %cst_7 : f32 to vector<1x2048xf32>
    %25 = arith.subf %23, %24 : vector<1x2048xf32>
    %cst_8 = arith.constant 3.000000e-01 : f32
    %26 = vector.broadcast %cst_8 : f32 to vector<1x2048xf32>
    %27 = arith.addf %25, %26 : vector<1x2048xf32>
    %cst_9 = arith.constant dense<0.000000e+00> : vector<1xf32>
    %28 = vector.multi_reduction <add>, %27, %cst_9 [1] : vector<1x2048xf32> to vector<1xf32>
    %29 = vector.shape_cast %28 : vector<1xf32> to vector<1x1xf32>
    %cst_10 = arith.constant 2.048000e+03 : f32
    %30 = vector.broadcast %cst_10 : f32 to vector<1x1xf32>
    %31 = arith.divf %29, %30 : vector<1x1xf32>
    %c0_11 = arith.constant 0 : index
    %c0_12 = arith.constant 0 : index
    %32 = vector.load %arg2[%c0_11, %c0_12] : memref<1x1xf32, #tpu.memory_space<vmem>>, vector<1x1xf32>
    tpu.vector_store %arg2[%c0_11, %c0_12], %31 {strides = array<i32>} : memref<1x1xf32, #tpu.memory_space<vmem>>, vector<1x1xf32>,
    return
  }
  func.func @transform_0(%arg0: i32) -> (i32, i32) {
    %c0_i32 = arith.constant 0 : i32
    %c0_i32_0 = arith.constant 0 : i32
    %c0_i32_1 = arith.constant 0 : i32
    return %c0_i32, %c0_i32_0 : i32, i32
  }
  func.func @transform_1(%arg0: i32) -> (i32, i32) {
    %c0_i32 = arith.constant 0 : i32
    %c0_i32_0 = arith.constant 0 : i32
    %c0_i32_1 = arith.constant 0 : i32
    return %c0_i32, %c0_i32_0 : i32, i32
  }
}

</mosaic_0001>

<bundles_post_ra>
// kernel: tpu_custom_call.1
= control target key start
LH: loop header
LB: loop body
LE: loop exit
PB: predicated region body
PF: predicated region fallthrough
CT: control target
= control target key end

     0   :  { %6 = vsyncpa [#allocation3], 0  ;;  %s1122_s0 = inlined_call_operand.hbm [shape: f32[2,2048], index: 0, kind: input, shape index: {}]   ;;  %s1123_s1 = inlined_call_operand.hbm [shape: f32[1,1], index: 1, kind: output, shape index: {}]  }
   0x1   :  { %7 = vsyncpa [#allocation4], 0  ;;  %s828_s6 = smov [#allocation2]   ;;  %s780_s10 = scalar_lea.hbm %s1122_s0, 512 }
   0x2   :  { %s14_s7 = sshll.u32 %s828_s6, 4  ;;  %p781_p0 = scmp.ne.s32.totalorder %s1122_s0, %s780_s10  ;;  %s15_s7 = int_to_ptr.vmem [resolvable:$true] %s14_s7 }
   0x3   :  { %p784_p1 = scmp.lt.u32.totalorder %s780_s10, %s1122_s0 }
   0x5   :  { %p786_p2 = pnand %p784_p1, %p781_p0 }
   0x7   :  { %789 = shalt.err (!%p786_p2)
}
   0x8   :  { %s790_s15 = scalar_lea.vmem %s15_s7, 512  ;;  %p795_p4 = scmp.lt.s32.totalorder %s15_s7, %s15_s7 }
   0x9   :  { %p791_p3 = scmp.ne.s32.totalorder %s15_s7, %s790_s15  ;;  %p796_p5 = scmp.lt.s32.totalorder %s790_s15, %s790_s15 }
   0xb   :  { %p797_p6 = por %p796_p5, %p795_p4 }
   0xd   :  { %p798_p7 = pnand %p797_p6, %p791_p3 }
   0xf   :  { %801 = shalt.err (!%p798_p7)
}
  0x10   :  { %17 = dma.hbm_to_vmem [thread:$0]  %s1122_s0, 512, %s15_s7, [#allocation3]  }
  0x11   :  { %824 = dma.done.wait [#allocation3], 512  }
  0x12   :  { %825 = vsyncadd [#allocation3], 4294966784  ;;  %v33_v0 = vlaneseq  ;;  %v829_v1 = vmov 1983009808   ;;  %v855_v6 = vld [vmem:[#allocation2] sm:$0xff]  ;;  %v857_v7 = vld [vmem:[#allocation2 + $0x8] sm:$0xff] }
  0x13   :  { %v31_v2 = vunpack.c.l.s4 %v829_v1  ;;  %v859_v8 = vld [vmem:[#allocation2 + $0x10] sm:$0xff]  ;;  %vm113_vm0 = vcmask 1041408   ;;  %v861_v9 = vld [vmem:[#allocation2 + $0x18] sm:$0xff]  ;;  %v29_v10 = vcombine.high %v855_v6, %v855_v6  ;;  %v46_v12 = vcombine.high %v857_v7, %v857_v7  ;;  %s830_s0 = smov [#allocation5]  }
  0x14   :  { %v34_v3 = vshrl.u32 %v33_v0, 7  ;;  %v63_v14 = vcombine.high %v859_v8, %v859_v8  ;;  %v80_v16 = vcombine.high %v861_v9, %v861_v9  ;;  %s714_s18 = sshll.u32 %s830_s0, 4  ;;  %vm706_vm1 = vcmask 0   ;;  %s715_s18 = int_to_ptr.vmem [resolvable:$true] %s714_s18 }
  0x15   :  { %v32_v4 = vunpack.c.0.s8 %v31_v2  ;;  %s802_s19 = scalar_lea.vmem %s715_s18, 16  ;;  %s806_s20 = scalar_lea.vmem %s715_s18, 32 }
  0x16   :  { %p803_p8 = scmp.ne.s32.totalorder %s715_s18, %s802_s19  ;;  %p807_p9 = scmp.lt.s32.totalorder %s715_s18, %s715_s18 }
  0x17   :  { %v853_v5 = vsub.s32 %v32_v4, %v34_v3  ;;  %p808_p10 = scmp.lt.s32.totalorder %s806_s20, %s802_s19 }
  0x19   :  { %v36_v11 = vrot.slane %v855_v6, %v853_v5  ;;  %v53_v13 = vrot.slane %v857_v7, %v853_v5  ;;  %v875_v15 = vrot.slane %v859_v8, %v853_v5  ;;  %v881_v17 = vrot.slane %v861_v9, %v853_v5  ;;  %p809_p11 = por %p808_p10, %p807_p9 }
  0x1a   :  { %v43_v18 = vrot.slane %v29_v10, %v853_v5  ;;  %v60_v20 = vrot.slane %v46_v12, %v853_v5  ;;  %v886_v22 = vrot.slane %v63_v14, %v853_v5  ;;  %v891_v24 = vrot.slane %v80_v16, %v853_v5 }
  0x1b   :  { %v44_v19 = vcombine.high %v36_v11, %v36_v11  ;;  %v61_v21 = vcombine.high %v53_v13, %v53_v13  ;;  %v78_v23 = vcombine.high %v875_v15, %v875_v15  ;;  %v95_v25 = vcombine.high %v881_v17, %v881_v17  ;;  %p810_p12 = pnand %p809_p11, %p803_p8 }
  0x1c   :  { %v45_v26 = vcombine.high %v43_v18, %v43_v18  ;;  %v62_v27 = vcombine.high %v60_v20, %v60_v20  ;;  %v114_v28 = vsel %vm113_vm0, %v36_v11, 0.0  ;;  %v79_v30 = vcombine.high %v886_v22, %v886_v22 }
  0x1d   :  { %v121_v29 = vsel %vm113_vm0, %v44_v19, 0.0  ;;  %v96_v31 = vcombine.high %v891_v24, %v891_v24  ;;  %v115_v32 = vrot.slane %v114_v28, 4  ;;  %v128_v34 = vsel %vm113_vm0, %v43_v18, 0.0 }
  0x1e   :  { %v122_v33 = vrot.slane %v121_v29, 4  ;;  %v135_v35 = vsel %vm113_vm0, %v45_v26, 0.0  ;;  %v142_v36 = vsel %vm113_vm0, %v53_v13, 0.0  ;;  %v149_v37 = vsel %vm113_vm0, %v61_v21, 0.0 }
  0x1f   :  { %v116_v38 = vadd.f32 %v115_v32, %v114_v28  ;;  %v129_v40 = vrot.slane %v128_v34, 4  ;;  %v136_v41 = vrot.slane %v135_v35, 4  ;;  %v143_v42 = vrot.slane %v142_v36, 4 }
  0x20   :  { %v123_v39 = vadd.f32 %v122_v33, %v121_v29  ;;  %v150_v43 = vrot.slane %v149_v37, 4  ;;  %v156_v44 = vsel %vm113_vm0, %v60_v20, 0.0  ;;  %v163_v45 = vsel %vm113_vm0, %v62_v27, 0.0 }
  0x21   :  { %v117_v46 = vrot.slane %v116_v38, 2  ;;  %v130_v48 = vadd.f32 %v129_v40, %v128_v34  ;;  %v137_v49 = vadd.f32 %v136_v41, %v135_v35  ;;  %v144_v50 = vadd.f32 %v143_v42, %v142_v36 }
  0x22   :  { %v124_v47 = vrot.slane %v123_v39, 2  ;;  %v151_v51 = vadd.f32 %v150_v43, %v149_v37  ;;  %v157_v52 = vrot.slane %v156_v44, 4  ;;  %v164_v53 = vrot.slane %v163_v45, 4 }
  0x23   :  { %v118_v54 = vadd.f32 %v117_v46, %v116_v38  ;;  %v131_v56 = vrot.slane %v130_v48, 2  ;;  %v138_v57 = vrot.slane %v137_v49, 2  ;;  %v145_v58 = vrot.slane %v144_v50, 2 }
  0x24   :  { %v125_v55 = vadd.f32 %v124_v47, %v123_v39  ;;  %v152_v59 = vrot.slane %v151_v51, 2  ;;  %v158_v60 = vadd.f32 %v157_v52, %v156_v44  ;;  %v165_v61 = vadd.f32 %v164_v53, %v163_v45 }
  0x25   :  { %v119_v62 = vrot.slane %v118_v54, 1  ;;  %v132_v0 = vadd.f32 %v131_v56, %v130_v48  ;;  %v139_v1 = vadd.f32 %v138_v57, %v137_v49  ;;  %v146_v2 = vadd.f32 %v145_v58, %v144_v50 }
  0x26   :  { %v126_v63 = vrot.slane %v125_v55, 1  ;;  %v153_v3 = vadd.f32 %v152_v59, %v151_v51  ;;  %v159_v4 = vrot.slane %v158_v60, 2  ;;  %v166_v10 = vrot.slane %v165_v61, 2 }
  0x27   :  { %v907_v11 = vadd.f32 %v119_v62, %v118_v54  ;;  %v133_v13 = vrot.slane %v132_v0, 1  ;;  %v140_v14 = vrot.slane %v139_v1, 1  ;;  %v147_v16 = vrot.slane %v146_v2, 1 }
  0x28   :  { %v909_v12 = vadd.f32 %v126_v63, %v125_v55  ;;  %v154_v18 = vrot.slane %v153_v3, 1  ;;  %v160_v19 = vadd.f32 %v159_v4, %v158_v60  ;;  %v167_v20 = vadd.f32 %v166_v10, %v165_v61 }
  0x29   :  { %v134_v21 = vadd.f32 %v133_v13, %v132_v0  ;;  %v141_v26 = vadd.f32 %v140_v14, %v139_v1  ;;  %v170_v27 = vsel %vm113_vm0, %v875_v15, 0.0  ;;  %v177_v28 = vsel %vm113_vm0, %v78_v23, 0.0 }
  0x2a   :  { %v148_v29 = vadd.f32 %v147_v16, %v146_v2  ;;  %v155_v32 = vadd.f32 %v154_v18, %v153_v3  ;;  %v161_v33 = vrot.slane %v160_v19, 1  ;;  %v168_v34 = vrot.slane %v167_v20, 1 }
  0x2b   :  { %v171_v35 = vrot.slane %v170_v27, 4  ;;  %v178_v36 = vrot.slane %v177_v28, 4  ;;  %v184_v37 = vsel %vm113_vm0, %v886_v22, 0.0  ;;  %v191_v38 = vsel %vm113_vm0, %v79_v30, 0.0 }
  0x2c   :  { %v162_v39 = vadd.f32 %v161_v33, %v160_v19  ;;  %v169_v40 = vadd.f32 %v168_v34, %v167_v20  ;;  %v185_v41 = vrot.slane %v184_v37, 4  ;;  %v192_v42 = vrot.slane %v191_v38, 4 }
  0x2d   :  { %v172_v43 = vadd.f32 %v171_v35, %v170_v27  ;;  %v179_v44 = vadd.f32 %v178_v36, %v177_v28  ;;  %v198_v15 = vsel %vm113_vm0, %v881_v17, 0.0  ;;  %v205_v23 = vsel %vm113_vm0, %v95_v25, 0.0 }
  0x2e   :  { %v186_v45 = vadd.f32 %v185_v41, %v184_v37  ;;  %v193_v46 = vadd.f32 %v192_v42, %v191_v38  ;;  %v199_v47 = vrot.slane %v198_v15, 4  ;;  %v206_v22 = vrot.slane %v205_v23, 4 }
  0x2f   :  { %v173_v48 = vrot.slane %v172_v43, 2  ;;  %v180_v30 = vrot.slane %v179_v44, 2  ;;  %v212_v49 = vsel %vm113_vm0, %v891_v24, 0.0  ;;  %v219_v50 = vsel %vm113_vm0, %v96_v31, 0.0 }
  0x30   :  { %v187_v51 = vrot.slane %v186_v45, 2  ;;  %v194_v52 = vrot.slane %v193_v46, 2  ;;  %v200_v53 = vadd.f32 %v199_v47, %v198_v15  ;;  %v207_v17 = vadd.f32 %v206_v22, %v205_v23 }
  0x31   :  { %v174_v54 = vadd.f32 %v173_v48, %v172_v43  ;;  %v181_v25 = vadd.f32 %v180_v30, %v179_v44  ;;  %v213_v55 = vrot.slane %v212_v49, 4  ;;  %v220_v56 = vrot.slane %v219_v50, 4 }
  0x32   :  { %v188_v57 = vadd.f32 %v187_v51, %v186_v45  ;;  %v195_v58 = vadd.f32 %v194_v52, %v193_v46  ;;  %v201_v59 = vrot.slane %v200_v53, 2  ;;  %v208_v60 = vrot.slane %v207_v17, 2 }
  0x33   :  { %v175_v61 = vrot.slane %v174_v54, 1  ;;  %v182_v62 = vrot.slane %v181_v25, 1  ;;  %v214_v63 = vadd.f32 %v213_v55, %v212_v49  ;;  %v221_v0 = vadd.f32 %v220_v56, %v219_v50 }
  0x34   :  { %v189_v1 = vrot.slane %v188_v57, 1  ;;  %v196_v24 = vrot.slane %v195_v58, 1  ;;  %v202_v2 = vadd.f32 %v201_v59, %v200_v53  ;;  %v209_v31 = vadd.f32 %v208_v60, %v207_v17 }
  0x35   :  { %v176_v3 = vadd.f32 %v175_v61, %v174_v54  ;;  %v183_v4 = vadd.f32 %v182_v62, %v181_v25  ;;  %v215_v10 = vrot.slane %v214_v63, 2  ;;  %v222_v13 = vrot.slane %v221_v0, 2 }
  0x36   :  { %v190_v14 = vadd.f32 %v189_v1, %v188_v57  ;;  %v197_v16 = vadd.f32 %v196_v24, %v195_v58  ;;  %v203_v18 = vrot.slane %v202_v2, 1  ;;  %v210_v19 = vrot.slane %v209_v31, 1 }
  0x37   :  { %v216_v20 = vadd.f32 %v215_v10, %v214_v63  ;;  %v223_v27 = vadd.f32 %v222_v13, %v221_v0  ;;  %v227_v28 = vmul.f32 0.5, %v907_v11  ;;  %v228_v33 = vmul.f32 0.5, %v909_v12 }
  0x38   :  { %v204_v34 = vadd.f32 %v203_v18, %v202_v2  ;;  %v211_v35 = vadd.f32 %v210_v19, %v209_v31  ;;  %v229_v36 = vmul.f32 0.5, %v134_v21  ;;  %v230_v37 = vmul.f32 0.5, %v141_v26 }
  0x39   :  { %v217_v38 = vrot.slane %v216_v20, 1  ;;  %v224_v41 = vrot.slane %v223_v27, 1  ;;  %v231_v42 = vmul.f32 0.5, %v148_v29  ;;  %v232_v43 = vmul.f32 0.5, %v155_v32 }
  0x3a   :  { %v233_v44 = vmul.f32 0.5, %v162_v39  ;;  %v234_v15 = vmul.f32 0.5, %v169_v40  ;;  %v235_v23 = vmul.f32 0.5, %v176_v3  ;;  %v236_v45 = vmul.f32 0.5, %v183_v4 }
  0x3b   :  { %v218_v46 = vadd.f32 %v217_v38, %v216_v20  ;;  %v225_v47 = vadd.f32 %v224_v41, %v223_v27  ;;  %v237_v22 = vmul.f32 0.5, %v190_v14  ;;  %v238_v48 = vmul.f32 0.5, %v197_v16 }
  0x3c   :  { %v239_v30 = vmul.f32 0.5, %v204_v34  ;;  %v240_v11 = vmul.f32 0.5, %v211_v35  ;;  %v259_v49 = vcombine.low %v227_v28, %v228_v33  ;;  %v260_v12 = vcombine.low %v229_v36, %v230_v37 }
  0x3d   :  { %v241_v50 = vmul.f32 0.5, %v218_v46  ;;  %v242_v51 = vmul.f32 0.5, %v225_v47  ;;  %v276_v21 = vcombine.low %v231_v42, %v232_v43  ;;  %v277_v26 = vcombine.low %v233_v44, %v234_v15 }
  0x3e   :  { %v267_v52 = vrot.slane %v259_v49, %v853_v5  ;;  %v274_v29 = vrot.slane %v260_v12, %v853_v5  ;;  %v293_v32 = vcombine.low %v235_v23, %v236_v45  ;;  %v294_v39 = vcombine.low %v237_v22, %v238_v48 }
  0x3f   :  { %v284_v40 = vrot.slane %v276_v21, %v853_v5  ;;  %v291_v53 = vrot.slane %v277_v26, %v853_v5  ;;  %v310_v17 = vcombine.low %v239_v30, %v240_v11  ;;  %v311_v54 = vcombine.low %v241_v50, %v242_v51 }
  0x40   :  { %v275_v25 = vcombine.low %v267_v52, %v274_v29  ;;  %v301_v55 = vrot.slane %v293_v32, %v853_v5  ;;  %v308_v56 = vrot.slane %v294_v39, %v853_v5 }
  0x41   :  { %v292_v57 = vcombine.low %v284_v40, %v291_v53  ;;  %v318_v58 = vrot.slane %v310_v17, %v853_v5  ;;  %v325_v59 = vrot.slane %v311_v54, %v853_v5 }
  0x42   :  { %v309_v60 = vcombine.low %v301_v55, %v308_v56  ;;  %v331_v61 = vsub.f32 %v855_v6, %v275_v25 }
  0x43   :  { %v326_v62 = vcombine.low %v318_v58, %v325_v59  ;;  %v332_v63 = vsub.f32 %v857_v7, %v292_v57 }
  0x44   :  { %v333_v0 = vsub.f32 %v859_v8, %v309_v60  ;;  %v335_v1 = vmul.f32 %v331_v61, %v331_v61 }
  0x45   :  { %v334_v24 = vsub.f32 %v861_v9, %v326_v62  ;;  %v336_v2 = vmul.f32 %v332_v63, %v332_v63 }
  0x46   :  { %v337_v31 = vmul.f32 %v333_v0, %v333_v0  ;;  %v343_v3 = vcombine.high %v335_v1, %v335_v1  ;;  %v350_v4 = vrot.slane %v335_v1, %v853_v5 }
  0x47   :  { %v338_v10 = vmul.f32 %v334_v24, %v334_v24  ;;  %v360_v13 = vcombine.high %v336_v2, %v336_v2  ;;  %v367_v14 = vrot.slane %v336_v2, %v853_v5 }
  0x48   :  { %v357_v16 = vrot.slane %v343_v3, %v853_v5  ;;  %v358_v6 = vcombine.high %v350_v4, %v350_v4  ;;  %v377_v18 = vcombine.high %v337_v31, %v337_v31  ;;  %v947_v7 = vrot.slane %v337_v31, %v853_v5 }
  0x49   :  { %v374_v8 = vrot.slane %v360_v13, %v853_v5  ;;  %v375_v19 = vcombine.high %v367_v14, %v367_v14  ;;  %v394_v9 = vcombine.high %v338_v10, %v338_v10  ;;  %v951_v20 = vrot.slane %v338_v10, %v853_v5 }
  0x4a   :  { %v359_v27 = vcombine.high %v357_v16, %v357_v16  ;;  %v954_v28 = vrot.slane %v377_v18, %v853_v5  ;;  %v392_v33 = vcombine.high %v947_v7, %v947_v7  ;;  %v427_v34 = vsel %vm113_vm0, %v350_v4, 0.0 }
  0x4b   :  { %v376_v35 = vcombine.high %v374_v8, %v374_v8  ;;  %v960_v36 = vrot.slane %v394_v9, %v853_v5  ;;  %v409_v37 = vcombine.high %v951_v20, %v951_v20  ;;  %v428_v38 = vrot.slane %v427_v34, 4 }
  0x4c   :  { %v393_v41 = vcombine.high %v954_v28, %v954_v28  ;;  %v434_v42 = vsel %vm113_vm0, %v358_v6, 0.0  ;;  %v441_v43 = vsel %vm113_vm0, %v357_v16, 0.0  ;;  %v448_v44 = vsel %vm113_vm0, %v359_v27, 0.0 }
  0x4d   :  { %v410_v15 = vcombine.high %v960_v36, %v960_v36  ;;  %v429_v23 = vadd.f32 %v428_v38, %v427_v34  ;;  %v435_v45 = vrot.slane %v434_v42, 4  ;;  %v442_v5 = vrot.slane %v441_v43, 4 }
  0x4e   :  { %v449_v46 = vrot.slane %v448_v44, 4  ;;  %v455_v47 = vsel %vm113_vm0, %v367_v14, 0.0  ;;  %v462_v22 = vsel %vm113_vm0, %v375_v19, 0.0  ;;  %v469_v48 = vsel %vm113_vm0, %v374_v8, 0.0 }
  0x4f   :  { %v430_v30 = vrot.slane %v429_v23, 2  ;;  %v436_v11 = vadd.f32 %v435_v45, %v434_v42  ;;  %v443_v49 = vadd.f32 %v442_v5, %v441_v43  ;;  %v456_v12 = vrot.slane %v455_v47, 4 }
  0x50   :  { %v450_v50 = vadd.f32 %v449_v46, %v448_v44  ;;  %v463_v51 = vrot.slane %v462_v22, 4  ;;  %v470_v21 = vrot.slane %v469_v48, 4  ;;  %v476_v26 = vsel %vm113_vm0, %v376_v35, 0.0 }
  0x51   :  { %v431_v52 = vadd.f32 %v430_v30, %v429_v23  ;;  %v437_v29 = vrot.slane %v436_v11, 2  ;;  %v444_v32 = vrot.slane %v443_v49, 2  ;;  %v457_v39 = vadd.f32 %v456_v12, %v455_v47 }
  0x52   :  { %v451_v40 = vrot.slane %v450_v50, 2  ;;  %v464_v53 = vadd.f32 %v463_v51, %v462_v22  ;;  %v471_v17 = vadd.f32 %v470_v21, %v469_v48  ;;  %v477_v54 = vrot.slane %v476_v26, 4 }
  0x53   :  { %v432_v25 = vrot.slane %v431_v52, 1  ;;  %v438_v55 = vadd.f32 %v437_v29, %v436_v11  ;;  %v445_v56 = vadd.f32 %v444_v32, %v443_v49  ;;  %v458_v57 = vrot.slane %v457_v39, 2 }
  0x54   :  { %v452_v58 = vadd.f32 %v451_v40, %v450_v50  ;;  %v465_v59 = vrot.slane %v464_v53, 2  ;;  %v472_v60 = vrot.slane %v471_v17, 2  ;;  %v478_v61 = vadd.f32 %v477_v54, %v476_v26 }
  0x55   :  { %v975_v62 = vadd.f32 %v432_v25, %v431_v52  ;;  %v439_v63 = vrot.slane %v438_v55, 1  ;;  %v446_v0 = vrot.slane %v445_v56, 1  ;;  %v459_v1 = vadd.f32 %v458_v57, %v457_v39 }
  0x56   :  { %v453_v24 = vrot.slane %v452_v58, 1  ;;  %v466_v2 = vadd.f32 %v465_v59, %v464_v53  ;;  %v473_v31 = vadd.f32 %v472_v60, %v471_v17  ;;  %v479_v3 = vrot.slane %v478_v61, 2 }
  0x57   :  { %v977_v4 = vadd.f32 %v439_v63, %v438_v55  ;;  %v979_v10 = vadd.f32 %v446_v0, %v445_v56  ;;  %v460_v13 = vrot.slane %v459_v1, 1  ;;  %v483_v14 = vsel %vm113_vm0, %v947_v7, 0.0 }
  0x58   :  { %v983_v16 = vadd.f32 %v453_v24, %v452_v58  ;;  %v467_v6 = vrot.slane %v466_v2, 1  ;;  %v474_v18 = vrot.slane %v473_v31, 1  ;;  %v480_v8 = vadd.f32 %v479_v3, %v478_v61 }
  0x59   :  { %v985_v19 = vadd.f32 %v460_v13, %v459_v1  ;;  %v484_v9 = vrot.slane %v483_v14, 4  ;;  %v490_v27 = vsel %vm113_vm0, %v392_v33, 0.0  ;;  %v497_v34 = vsel %vm113_vm0, %v954_v28, 0.0 }
  0x5a   :  { %v990_v35 = vadd.f32 %v467_v6, %v466_v2  ;;  %v992_v38 = vadd.f32 %v474_v18, %v473_v31  ;;  %v481_v42 = vrot.slane %v480_v8, 1  ;;  %v491_v43 = vrot.slane %v490_v27, 4 }
  0x5b   :  { %v485_v7 = vadd.f32 %v484_v9, %v483_v14  ;;  %v498_v44 = vrot.slane %v497_v34, 4  ;;  %v504_v23 = vsel %vm113_vm0, %v393_v41, 0.0  ;;  %v511_v45 = vsel %vm113_vm0, %v951_v20, 0.0 }
  0x5c   :  { %v997_v5 = vadd.f32 %v481_v42, %v480_v8  ;;  %v492_v46 = vadd.f32 %v491_v43, %v490_v27  ;;  %v505_v33 = vrot.slane %v504_v23, 4  ;;  %v512_v47 = vrot.slane %v511_v45, 4 }
  0x5d   :  { %v486_v22 = vrot.slane %v485_v7, 2  ;;  %v499_v28 = vadd.f32 %v498_v44, %v497_v34  ;;  %v518_v48 = vsel %vm113_vm0, %v409_v37, 0.0  ;;  %v525_v30 = vsel %vm113_vm0, %v960_v36, 0.0 }
  0x5e   :  { %v493_v11 = vrot.slane %v492_v46, 2  ;;  %v506_v41 = vadd.f32 %v505_v33, %v504_v23  ;;  %v513_v49 = vadd.f32 %v512_v47, %v511_v45  ;;  %v519_v12 = vrot.slane %v518_v48, 4 }
  0x5f   :  { %v487_v50 = vadd.f32 %v486_v22, %v485_v7  ;;  %v500_v51 = vrot.slane %v499_v28, 2  ;;  %v526_v21 = vrot.slane %v525_v30, 4  ;;  %v532_v26 = vsel %vm113_vm0, %v410_v15, 0.0 }
  0x60   :  { %v494_v52 = vadd.f32 %v493_v11, %v492_v46  ;;  %v507_v29 = vrot.slane %v506_v41, 2  ;;  %v514_v20 = vrot.slane %v513_v49, 2  ;;  %v520_v32 = vadd.f32 %v519_v12, %v518_v48 }
  0x61   :  { %v488_v37 = vrot.slane %v487_v50, 1  ;;  %v501_v39 = vadd.f32 %v500_v51, %v499_v28  ;;  %v527_v40 = vadd.f32 %v526_v21, %v525_v30  ;;  %v533_v53 = vrot.slane %v532_v26, 4 }
  0x62   :  { %v495_v17 = vrot.slane %v494_v52, 1  ;;  %v508_v54 = vadd.f32 %v507_v29, %v506_v41  ;;  %v515_v25 = vadd.f32 %v514_v20, %v513_v49  ;;  %v521_v55 = vrot.slane %v520_v32, 2 }
  0x63   :  { %v1009_v56 = vadd.f32 %v488_v37, %v487_v50  ;;  %v502_v57 = vrot.slane %v501_v39, 1  ;;  %v528_v58 = vrot.slane %v527_v40, 2  ;;  %v534_v59 = vadd.f32 %v533_v53, %v532_v26 }
  0x64   :  { %v1011_v36 = vadd.f32 %v495_v17, %v494_v52  ;;  %v509_v15 = vrot.slane %v508_v54, 1  ;;  %v516_v60 = vrot.slane %v515_v25, 1  ;;  %v522_v61 = vadd.f32 %v521_v55, %v520_v32 }
  0x65   :  { %v1013_v63 = vadd.f32 %v502_v57, %v501_v39  ;;  %v529_v0 = vadd.f32 %v528_v58, %v527_v40  ;;  %v535_v1 = vrot.slane %v534_v59, 2  ;;  %v539_v24 = vmin.f32 %v975_v62, %v985_v19 }
  0x66   :  { %v1017_v2 = vadd.f32 %v509_v15, %v508_v54  ;;  %v1019_v31 = vadd.f32 %v516_v60, %v515_v25  ;;  %v523_v3 = vrot.slane %v522_v61, 1  ;;  %v540_v13 = vmin.f32 %v977_v4, %v990_v35 }
  0x67   :  { %v530_v14 = vrot.slane %v529_v0, 1  ;;  %v536_v6 = vadd.f32 %v535_v1, %v534_v59  ;;  %v541_v18 = vmin.f32 %v979_v10, %v992_v38  ;;  %v542_v8 = vmin.f32 %v983_v16, %v997_v5 }
  0x68   :  { %v1027_v9 = vadd.f32 %v523_v3, %v522_v61  ;;  %v543_v27 = vmin.f32 %v539_v24, %v1009_v56  ;;  %v544_v34 = vmin.f32 %v540_v13, %v1011_v36  ;;  %v556_v42 = vmax.f32 %v975_v62, %v985_v19 }
  0x69   :  { %v1033_v43 = vadd.f32 %v530_v14, %v529_v0  ;;  %v537_v7 = vrot.slane %v536_v6, 1  ;;  %v545_v44 = vmin.f32 %v541_v18, %v1013_v63  ;;  %v546_v23 = vmin.f32 %v542_v8, %v1017_v2 }
  0x6a   :  { %v547_v45 = vmin.f32 %v543_v27, %v1019_v31  ;;  %v548_v46 = vmin.f32 %v544_v34, %v1027_v9  ;;  %v557_v33 = vmax.f32 %v977_v4, %v990_v35  ;;  %v558_v47 = vmax.f32 %v979_v10, %v992_v38 }
  0x6b   :  { %v1043_v22 = vadd.f32 %v537_v7, %v536_v6  ;;  %v549_v28 = vmin.f32 %v545_v44, %v1033_v43  ;;  %v559_v48 = vmax.f32 %v983_v16, %v997_v5  ;;  %v560_v30 = vmax.f32 %v556_v42, %v1009_v56 }
  0x6c   :  { %v561_v11 = vmax.f32 %v557_v33, %v1011_v36  ;;  %v562_v41 = vmax.f32 %v558_v47, %v1013_v63  ;;  %v551_v12 = vmin.f32 %v547_v45, %v548_v46 }
  0x6d   :  { %v550_v49 = vmin.f32 %v546_v23, %v1043_v22  ;;  %v563_v50 = vmax.f32 %v559_v48, %v1017_v2  ;;  %v564_v51 = vmax.f32 %v560_v30, %v1019_v31 }
  0x6e   :  { %v565_v21 = vmax.f32 %v561_v11, %v1027_v9  ;;  %v566_v26 = vmax.f32 %v562_v41, %v1033_v43 }
  0x6f   :  { %v552_v52 = vmin.f32 %v549_v28, %v550_v49  ;;  %v567_v29 = vmax.f32 %v563_v50, %v1043_v22 }
  0x70   :  { %v568_v20 = vmax.f32 %v564_v51, %v565_v21 }
  0x71   :  { %v553_v32 = vmin.f32 %v551_v12, %v552_v52  ;;  %v569_v37 = vmax.f32 %v566_v26, %v567_v29 }
  0x73   :  { %554 = vmin.xlane.f32.xlu0 %v553_v32  ;;  %v570_v39 = vmax.f32 %v568_v20, %v569_v37 }
  0x77   :  { %571 = vmax.xlane.f32.xlu0 %v570_v39 }
 0x100   :  { %v1057_v40 = vpop.xlane.xlu0 %554 }
 0x101   :  { %v573_v25 = vsub.f32 %v975_v62, %v1057_v40  ;;  %v574_v55 = vsub.f32 %v977_v4, %v1057_v40  ;;  %v575_v57 = vsub.f32 %v979_v10, %v1057_v40  ;;  %v576_v58 = vsub.f32 %v983_v16, %v1057_v40 }
 0x102   :  { %v577_v59 = vsub.f32 %v985_v19, %v1057_v40  ;;  %v578_v61 = vsub.f32 %v990_v35, %v1057_v40  ;;  %v579_v10 = vsub.f32 %v992_v38, %v1057_v40  ;;  %v580_v24 = vsub.f32 %v997_v5, %v1057_v40 }
 0x103   :  { %v581_v6 = vsub.f32 %v1009_v56, %v1057_v40  ;;  %v582_v38 = vsub.f32 %v1011_v36, %v1057_v40  ;;  %v583_v23 = vsub.f32 %v1013_v63, %v1057_v40  ;;  %v584_v36 = vsub.f32 %v1017_v2, %v1057_v40 }
 0x104   :  { %v572_v53 = vpop.xlane.xlu0 %571  ;;  %v585_v30 = vsub.f32 %v1019_v31, %v1057_v40  ;;  %v586_v49 = vsub.f32 %v1027_v9, %v1057_v40  ;;  %v587_v51 = vsub.f32 %v1033_v43, %v1057_v40  ;;  %v588_v29 = vsub.f32 %v1043_v22, %v1057_v40 }
 0x105   :  { %v589_v17 = vsub.f32 %v572_v53, %v1057_v40 }
 0x107   :  { %746 = vrcp.f32 %v589_v17 }
 0x111   :  { %v1060_v54 = vpop.eup %746 }
 0x112   :  { %v591_v15 = vmul.f32 %v1060_v54, %v573_v25  ;;  %v592_v60 = vmul.f32 %v1060_v54, %v574_v55  ;;  %v593_v62 = vmul.f32 %v1060_v54, %v575_v57  ;;  %v594_v4 = vmul.f32 %v1060_v54, %v576_v58 }
 0x113   :  { %v595_v0 = vmul.f32 %v1060_v54, %v577_v59  ;;  %v596_v16 = vmul.f32 %v1060_v54, %v578_v61  ;;  %v597_v3 = vmul.f32 %v1060_v54, %v579_v10  ;;  %v598_v18 = vmul.f32 %v1060_v54, %v580_v24 }
 0x114   :  { %v607_v1 = vmul.f32 0.3, %v591_v15  ;;  %v608_v19 = vmul.f32 0.3, %v592_v60  ;;  %v609_v13 = vmul.f32 0.3, %v593_v62  ;;  %v599_v42 = vmul.f32 %v1060_v54, %v581_v6 }
 0x115   :  { %v610_v35 = vmul.f32 0.3, %v594_v4  ;;  %v611_v14 = vmul.f32 0.3, %v595_v0  ;;  %v612_v8 = vmul.f32 0.3, %v596_v16  ;;  %v600_v56 = vmul.f32 %v1060_v54, %v582_v38 }
 0x116   :  { %v623_v27 = vmul.f32 1.442695, %v607_v1  ;;  %v625_v34 = vmul.f32 1.442695, %v608_v19  ;;  %v613_v7 = vmul.f32 0.3, %v597_v3  ;;  %v601_v47 = vmul.f32 %v1060_v54, %v583_v23 }
 0x117   :  { %v627_v5 = vmul.f32 1.442695, %v609_v13  ;;  %v629_v44 = vmul.f32 1.442695, %v610_v35  ;;  %v631_v45 = vmul.f32 1.442695, %v611_v14  ;;  %v602_v63 = vmul.f32 %v1060_v54, %v584_v36 }
 0x118   :  { %748 = vpow2.f32 %v623_v27  ;;  %v614_v46 = vmul.f32 0.3, %v598_v18  ;;  %v633_v33 = vmul.f32 1.442695, %v612_v8  ;;  %v615_v28 = vmul.f32 0.3, %v599_v42 }
 0x119   :  { %750 = vpow2.f32 %v625_v34  ;;  %v635_v48 = vmul.f32 1.442695, %v613_v7  ;;  %v616_v11 = vmul.f32 0.3, %v600_v56  ;;  %v603_v2 = vmul.f32 %v1060_v54, %v585_v30 }
 0x11a   :  { %752 = vpow2.f32 %v627_v5  ;;  %v637_v41 = vmul.f32 1.442695, %v614_v46  ;;  %v617_v12 = vmul.f32 0.3, %v601_v47  ;;  %v639_v50 = vmul.f32 1.442695, %v615_v28 }
 0x11b   :  { %754 = vpow2.f32 %v629_v44  ;;  %v604_v21 = vmul.f32 %v1060_v54, %v586_v49  ;;  %v618_v31 = vmul.f32 0.3, %v602_v63  ;;  %v641_v26 = vmul.f32 1.442695, %v616_v11 }
 0x11c   :  { %756 = vpow2.f32 %v631_v45  ;;  %v605_v20 = vmul.f32 %v1060_v54, %v587_v51  ;;  %v619_v32 = vmul.f32 0.3, %v603_v2  ;;  %v643_v37 = vmul.f32 1.442695, %v617_v12 }
 0x11d   :  { %758 = vpow2.f32 %v633_v33  ;;  %v606_v17 = vmul.f32 %v1060_v54, %v588_v29  ;;  %v620_v43 = vmul.f32 0.3, %v604_v21  ;;  %v645_v57 = vmul.f32 1.442695, %v618_v31 }
 0x11e   :  { %760 = vpow2.f32 %v635_v48  ;;  %v621_v61 = vmul.f32 0.3, %v605_v20  ;;  %v647_v62 = vmul.f32 1.442695, %v619_v32 }
 0x11f   :  { %762 = vpow2.f32 %v637_v41  ;;  %v622_v1 = vmul.f32 0.3, %v606_v17  ;;  %v649_v54 = vmul.f32 1.442695, %v620_v43 }
 0x120   :  { %764 = vpow2.f32 %v639_v50  ;;  %v651_v35 = vmul.f32 1.442695, %v621_v61 }
 0x121   :  { %766 = vpow2.f32 %v641_v26  ;;  %v653_v38 = vmul.f32 1.442695, %v622_v1 }
 0x122   :  { %v749_v52 = vpop.eup %748  ;;  %768 = vpow2.f32 %v643_v37 }
 0x123   :  { %v751_v9 = vpop.eup %750  ;;  %v723_v39 = vadd.f32 -1.0, %v749_v52  ;;  %770 = vpow2.f32 %v645_v57 }
 0x124   :  { %v753_v53 = vpop.eup %752  ;;  %v724_v25 = vadd.f32 -1.0, %v751_v9  ;;  %772 = vpow2.f32 %v647_v62 }
 0x125   :  { %v755_v55 = vpop.eup %754  ;;  %v725_v58 = vadd.f32 -1.0, %v753_v53  ;;  %v671_v59 = vadd.f32 0.3, %v723_v39  ;;  %774 = vpow2.f32 %v649_v54 }
 0x126   :  { %v757_v15 = vpop.eup %756  ;;  %v726_v60 = vadd.f32 -1.0, %v755_v55  ;;  %v672_v22 = vadd.f32 0.3, %v724_v25  ;;  %776 = vpow2.f32 %v651_v35 }
 0x127   :  { %v759_v40 = vpop.eup %758  ;;  %v727_v4 = vadd.f32 -1.0, %v757_v15  ;;  %v673_v0 = vadd.f32 0.3, %v725_v58  ;;  %778 = vpow2.f32 %v653_v38 }
 0x128   :  { %v687_v10 = vadd.f32 %v672_v22, %v671_v59  ;;  %v761_v16 = vpop.eup %760  ;;  %v728_v19 = vadd.f32 -1.0, %v759_v40  ;;  %v674_v24 = vadd.f32 0.3, %v726_v60 }
 0x129   :  { %v763_v13 = vpop.eup %762  ;;  %v729_v14 = vadd.f32 -1.0, %v761_v16  ;;  %v675_v6 = vadd.f32 0.3, %v727_v4 }
 0x12a   :  { %v688_v3 = vadd.f32 %v687_v10, %v673_v0  ;;  %v765_v8 = vpop.eup %764  ;;  %v730_v27 = vadd.f32 -1.0, %v763_v13  ;;  %v676_v34 = vadd.f32 0.3, %v728_v19 }
 0x12b   :  { %v767_v7 = vpop.eup %766  ;;  %v731_v5 = vadd.f32 -1.0, %v765_v8  ;;  %v677_v44 = vadd.f32 0.3, %v729_v14 }
 0x12c   :  { %v689_v18 = vadd.f32 %v688_v3, %v674_v24  ;;  %v769_v45 = vpop.eup %768  ;;  %v732_v56 = vadd.f32 -1.0, %v767_v7  ;;  %v678_v46 = vadd.f32 0.3, %v730_v27 }
 0x12d   :  { %v771_v36 = vpop.eup %770  ;;  %v733_v47 = vadd.f32 -1.0, %v769_v45  ;;  %v679_v28 = vadd.f32 0.3, %v731_v5 }
 0x12e   :  { %v690_v42 = vadd.f32 %v689_v18, %v675_v6  ;;  %v773_v30 = vpop.eup %772  ;;  %v734_v63 = vadd.f32 -1.0, %v771_v36  ;;  %v680_v11 = vadd.f32 0.3, %v732_v56 }
 0x12f   :  { %v775_v49 = vpop.eup %774  ;;  %v735_v2 = vadd.f32 -1.0, %v773_v30  ;;  %v681_v12 = vadd.f32 0.3, %v733_v47 }
 0x130   :  { %v691_v23 = vadd.f32 %v690_v42, %v676_v34  ;;  %v777_v51 = vpop.eup %776  ;;  %v736_v21 = vadd.f32 -1.0, %v775_v49  ;;  %v682_v31 = vadd.f32 0.3, %v734_v63 }
 0x131   :  { %v779_v52 = vpop.eup %778  ;;  %v737_v29 = vadd.f32 -1.0, %v777_v51  ;;  %v683_v20 = vadd.f32 0.3, %v735_v2 }
 0x132   :  { %v692_v33 = vadd.f32 %v691_v23, %v677_v44  ;;  %v738_v32 = vadd.f32 -1.0, %v779_v52  ;;  %v684_v37 = vadd.f32 0.3, %v736_v21 }
 0x133   :  { %v685_v53 = vadd.f32 0.3, %v737_v29 }
 0x134   :  { %v693_v48 = vadd.f32 %v692_v33, %v678_v46  ;;  %v686_v43 = vadd.f32 0.3, %v738_v32 }
 0x136   :  { %v694_v41 = vadd.f32 %v693_v48, %v679_v28 }
 0x138   :  { %v695_v50 = vadd.f32 %v694_v41, %v680_v11 }
 0x13a   :  { %v696_v26 = vadd.f32 %v695_v50, %v681_v12 }
 0x13c   :  { %v697_v9 = vadd.f32 %v696_v26, %v682_v31 }
 0x13e   :  { %v698_v39 = vadd.f32 %v697_v9, %v683_v20 }
 0x140   :  { %v699_v17 = vadd.f32 %v698_v39, %v684_v37 }
 0x142   :  { %v700_v25 = vadd.f32 %v699_v17, %v685_v53 }
 0x144   :  { %v701_v55 = vadd.f32 %v700_v25, %v686_v43 }
 0x146   :  { %702 = vadd.xlane.f32.xlu1 %v701_v55 }
 0x1d3   :  { %v703_v57 = vpop.xlane.xlu1 %702 }
 0x1d4   :  { %v705_v58 = vmul.f32 0.00048828125, %v703_v57 }
 0x1d6   :  { %707 = vst.msk [vmem:[#allocation5] sm:$0x1] %vm706_vm1, %v705_v58 }
 0x1d7   :  { %813 = shalt.err (!%p810_p12)
}
 0x1d8   :  { %s814_s23 = scalar_lea.hbm %s1123_s1, 16 }
 0x1d9   :  { %p815_p13 = scmp.ne.s32.totalorder %s1123_s1, %s814_s23  ;;  %p818_p0 = scmp.lt.u32.totalorder %s814_s23, %s1123_s1 }
 0x1db   :  { %p820_p1 = pnand %p818_p0, %p815_p13 }
 0x1dd   :  { %823 = shalt.err (!%p820_p1)
}
 0x1de   :  { %717 = dma.vmem_to_hbm [thread:$0]  %s715_s18, 16, %s1123_s1, [#allocation4]  }
 0x1df   :  { %826 = dma.done.wait [#allocation4], 16  }
 0x1e0   :  { %827 = vsyncadd [#allocation4], 4294967280 }
 0x1e1   :  { %721 = vsyncpa [#allocation3], 1 }
 0x1e2   :  { %722 = vsyncpa [#allocation4], 1 }

</bundles_post_ra>
